<compile_context>
chip_gen: v5e
topology: v5e:2x2
jax: 0.10.0
libtpu: 0.0.40
codegen_flags: <defaults>
</compile_context>

<pallas_src>
import functools

import jax
import jax.numpy as jnp
from jax.experimental import pallas as pl
from jax.experimental.pallas import tpu as pltpu


def dqn_kernel(x_ref, w1_ref, b1_ref, w2_ref, b2_ref, w3_ref, b3_ref,
               out_ref, acc_ref):
    k = pl.program_id(1)

    @pl.when(k == 0)
    def _():
        acc_ref[...] = jnp.zeros_like(acc_ref)

    # Partial fc1 product over the current K tile.  x / W1 are streamed in
    # bf16; accumulation stays fp32.
    acc_ref[...] += jnp.dot(x_ref[...], w1_ref[...],
                            preferred_element_type=jnp.float32)

    @pl.when(k == pl.num_programs(1) - 1)
    def _():
        h1 = jnp.maximum(acc_ref[...] + b1_ref[...], 0.0)             # relu(fc1)
        h2 = jnp.maximum(
            jnp.dot(h1, w2_ref[...], preferred_element_type=jnp.float32)
            + b2_ref[...], 0.0)                                       # relu(fc2)
        out_ref[...] = (jnp.dot(h2, w3_ref[...],
                                preferred_element_type=jnp.float32)
                        + b3_ref[...]).astype(out_ref.dtype)          # fc3


def _largest_aligned_divisor(total, target, align):
    """Largest divisor of `total` that is <= target and a multiple of `align`
    (falls back to `total`, which is always a legal full-extent block)."""
    if total <= target:
        return total
    start = target - (target % align)
    for cand in range(start, 0, -align):
        if total % cand == 0:
            return cand
    return total


def dqn_forward(x_nchw, w1, b1, w2, b2, w3, b3, *,
                stream_dtype=jnp.bfloat16, max_tb=256,
                vmem_budget_bytes=8 * 1024 * 1024):
    """x_nchw: (B, C, H, W) float32.  Weights in (in, out) layout, biases (1, out)."""
    B = x_nchw.shape[0]
    x = x_nchw.reshape(B, -1)                  # == torch.flatten(x, start_dim=1)
    in_dim = x.shape[1]
    hid = w1.shape[1]
    out_dim = w3.shape[1]

    # Stream the big operands in reduced precision; fp32 accumulation in-kernel.
    xc = x.astype(stream_dtype)
    w1c = w1.astype(stream_dtype)
    itemsize = jnp.dtype(stream_dtype).itemsize

    # Batch tile (full batch for small B; multiples of 8 otherwise).
    tb = _largest_aligned_divisor(B, max_tb, 8)

    # K tile: biggest lane-aligned divisor of in_dim such that the
    # double-buffered (x tile + w1 tile) fits the VMEM budget.
    max_tk = max(128, vmem_budget_bytes // (2 * (tb + hid) * itemsize))
    tk = _largest_aligned_divisor(in_dim, max_tk, 128)
    assert in_dim % tk == 0 and B % tb == 0

    grid = (B // tb, in_dim // tk)

    return pl.pallas_call(
        dqn_kernel,
        out_shape=jax.ShapeDtypeStruct((B, out_dim), jnp.float32),
        grid_spec=pltpu.PrefetchScalarGridSpec(
            num_scalar_prefetch=0,
            grid=grid,
            in_specs=[
                pl.BlockSpec((tb, tk),       lambda b, k: (b, k)),   # x tile (bf16)
                pl.BlockSpec((tk, hid),      lambda b, k: (k, 0)),   # w1 tile (bf16)
                pl.BlockSpec((1, hid),       lambda b, k: (0, 0)),   # b1
                pl.BlockSpec((hid, hid),     lambda b, k: (0, 0)),   # w2 (fp32)
                pl.BlockSpec((1, hid),       lambda b, k: (0, 0)),   # b2
                pl.BlockSpec((hid, out_dim), lambda b, k: (0, 0)),   # w3 (fp32)
                pl.BlockSpec((1, out_dim),   lambda b, k: (0, 0)),   # b3
            ],
            out_specs=pl.BlockSpec((tb, out_dim), lambda b, k: (b, 0)),
            scratch_shapes=[pltpu.VMEM((tb, hid), jnp.float32)],
        ),
        compiler_params=pltpu.CompilerParams(
            dimension_semantics=("parallel", "arbitrary")),  # (batch, reduction)
    )(xc, w1c, b1, w2, b2, w3, b3)


if __name__ == "__main__":
    # Small, consistent shapes: batch=2, "image" (4,16,16) -> flattened IN=1024.
    B, C, H, W = 2, 4, 16, 16
    IN = C * H * W            # 1024 (stands in for input_dim=98304)
    HID = 64
    OUT = 4                   # number of actions / output_dim

    key = jax.random.PRNGKey(0)
    kx, k1, k2, k3, kb1, kb2, kb3 = jax.random.split(key, 7)

    x = jax.random.normal(kx, (B, C, H, W), dtype=jnp.float32)
    # Deterministic synthetic parameters, (in, out) layout (== torch weight.T).
    w1 = jax.random.normal(k1, (IN, HID), dtype=jnp.float32) * 0.02
    w2 = jax.random.normal(k2, (HID, HID), dtype=jnp.float32) * 0.05
    w3 = jax.random.normal(k3, (HID, OUT), dtype=jnp.float32) * 0.05
    b1 = jax.random.normal(kb1, (1, HID), dtype=jnp.float32) * 0.01
    b2 = jax.random.normal(kb2, (1, HID), dtype=jnp.float32) * 0.01
    b3 = jax.random.normal(kb3, (1, OUT), dtype=jnp.float32) * 0.01

    out = dqn_forward(x, w1, b1, w2, b2, w3, b3)
    out = jax.block_until_ready(out)

    # Pure-JAX reference of the same math (x / W1 in bf16 for fc1, fp32 acc).
    xf = x.reshape(B, -1)
    h1 = jnp.maximum(
        jnp.dot(xf.astype(jnp.bfloat16), w1.astype(jnp.bfloat16),
                preferred_element_type=jnp.float32) + b1, 0.0)
    h2 = jnp.maximum(h1 @ w2 + b2, 0.0)
    ref = h2 @ w3 + b3

    assert out.shape == (B, OUT)
    assert jnp.allclose(out, ref, atol=2e-3, rtol=2e-3), (
        f"max abs diff = {jnp.max(jnp.abs(out - ref))}")

    print("KERNEL_OK")
</pallas_src>

<mosaic_0001>
module attributes {stable_mosaic.version = 11 : i64} {
  func.func @dqn_kernel(%arg0: i32, %arg1: i32, %arg2: memref<2x1024xbf16, #tpu.memory_space<vmem>>, %arg3: memref<1024x64xbf16, #tpu.memory_space<vmem>>, %arg4: memref<1x64xf32, #tpu.memory_space<vmem>>, %arg5: memref<64x64xf32, #tpu.memory_space<vmem>>, %arg6: memref<1x64xf32, #tpu.memory_space<vmem>>, %arg7: memref<64x4xf32, #tpu.memory_space<vmem>>, %arg8: memref<1x4xf32, #tpu.memory_space<vmem>>, %arg9: memref<2x4xf32, #tpu.memory_space<vmem>>, %arg10: memref<2x64xf32, #tpu.memory_space<vmem>>) attributes {dimension_semantics = [#tpu.dimension_semantics<parallel>, #tpu.dimension_semantics<arbitrary>], iteration_bounds = array<i64: 1, 1>, scalar_prefetch = 0 : i64, scratch_operands = 1 : i64, tpu.core_type = #tpu.core_type<tc>, window_params = [{transform_indices = @transform_0, window_bounds = array<i64: 2, 1024>}, {transform_indices = @transform_1, window_bounds = array<i64: 1024, 64>}, {pipeline_mode = #tpu.pipeline_mode<synchronous>, transform_indices = @transform_2, window_bounds = array<i64: 1, 64>}, {pipeline_mode = #tpu.pipeline_mode<synchronous>, transform_indices = @transform_3, window_bounds = array<i64: 64, 64>}, {pipeline_mode = #tpu.pipeline_mode<synchronous>, transform_indices = @transform_4, window_bounds = array<i64: 1, 64>}, {pipeline_mode = #tpu.pipeline_mode<synchronous>, transform_indices = @transform_5, window_bounds = array<i64: 64, 4>}, {pipeline_mode = #tpu.pipeline_mode<synchronous>, transform_indices = @transform_6, window_bounds = array<i64: 1, 4>}, {transform_indices = @transform_7, window_bounds = array<i64: 2, 4>}]} {
    %c0_i32 = arith.constant 0 : i32
    %0 = arith.cmpi eq, %arg1, %c0_i32 : i32
    %1 = arith.extui %0 : i1 to i32
    %c0_i32_0 = arith.constant 0 : i32
    %2 = arith.cmpi ne, %1, %c0_i32_0 : i32
    scf.if %2 {
      %cst_10 = arith.constant 0.000000e+00 : f32
      %12 = vector.broadcast %cst_10 : f32 to vector<2x64xf32>
      %c0_11 = arith.constant 0 : index
      %c0_12 = arith.constant 0 : index
      %13 = vector.load %arg10[%c0_11, %c0_12] : memref<2x64xf32, #tpu.memory_space<vmem>>, vector<2x64xf32>
      tpu.vector_store %arg10[%c0_11, %c0_12], %12 {strides = array<i32>} : memref<2x64xf32, #tpu.memory_space<vmem>>, vector<2x64xf32>,
    } else {
    }
    %c0 = arith.constant 0 : index
    %c0_1 = arith.constant 0 : index
    %3 = vector.load %arg10[%c0, %c0_1] : memref<2x64xf32, #tpu.memory_space<vmem>>, vector<2x64xf32>
    %c0_2 = arith.constant 0 : index
    %c0_3 = arith.constant 0 : index
    %4 = vector.load %arg2[%c0_2, %c0_3] : memref<2x1024xbf16, #tpu.memory_space<vmem>>, vector<2x1024xbf16>
    %c0_4 = arith.constant 0 : index
    %c0_5 = arith.constant 0 : index
    %5 = vector.load %arg3[%c0_4, %c0_5] : memref<1024x64xbf16, #tpu.memory_space<vmem>>, vector<1024x64xbf16>
    %cst = arith.constant dense<0.000000e+00> : vector<2x64xf32>
    %6 = tpu.matmul %4, %5, %cst {dimension_numbers = #tpu.dot_dimension_numbers<[1], [0], [0], [1], [0, 0, 1, 1], [], []>} : vector<2x1024xbf16>, vector<1024x64xbf16>, vector<2x64xf32> -> vector<2x64xf32>
    %7 = arith.addf %3, %6 : vector<2x64xf32>
    %c0_6 = arith.constant 0 : index
    %c0_7 = arith.constant 0 : index
    %8 = vector.load %arg10[%c0_6, %c0_7] : memref<2x64xf32, #tpu.memory_space<vmem>>, vector<2x64xf32>
    tpu.vector_store %arg10[%c0_6, %c0_7], %7 {strides = array<i32>} : memref<2x64xf32, #tpu.memory_space<vmem>>, vector<2x64xf32>,
    %c0_i32_8 = arith.constant 0 : i32
    %9 = arith.cmpi eq, %arg1, %c0_i32_8 : i32
    %10 = arith.extui %9 : i1 to i32
    %c0_i32_9 = arith.constant 0 : i32
    %11 = arith.cmpi ne, %10, %c0_i32_9 : i32
    scf.if %11 {
      %c0_10 = arith.constant 0 : index
      %c0_11 = arith.constant 0 : index
      %12 = vector.load %arg10[%c0_10, %c0_11] : memref<2x64xf32, #tpu.memory_space<vmem>>, vector<2x64xf32>
      %c0_12 = arith.constant 0 : index
      %c0_13 = arith.constant 0 : index
      %13 = vector.load %arg4[%c0_12, %c0_13] : memref<1x64xf32, #tpu.memory_space<vmem>>, vector<1x64xf32>
      %14 = vector.broadcast %13 : vector<1x64xf32> to vector<2x64xf32>
      %15 = arith.addf %12, %14 : vector<2x64xf32>
      %cst_14 = arith.constant 0.000000e+00 : f32
      %16 = vector.broadcast %cst_14 : f32 to vector<2x64xf32>
      %17 = arith.maximumf %15, %16 : vector<2x64xf32>
      %c0_15 = arith.constant 0 : index
      %c0_16 = arith.constant 0 : index
      %18 = vector.load %arg5[%c0_15, %c0_16] : memref<64x64xf32, #tpu.memory_space<vmem>>, vector<64x64xf32>
      %cst_17 = arith.constant dense<0.000000e+00> : vector<2x64xf32>
      %19 = tpu.matmul %17, %18, %cst_17 {dimension_numbers = #tpu.dot_dimension_numbers<[1], [0], [0], [1], [0, 0, 1, 1], [], []>} : vector<2x64xf32>, vector<64x64xf32>, vector<2x64xf32> -> vector<2x64xf32>
      %c0_18 = arith.constant 0 : index
      %c0_19 = arith.constant 0 : index
      %20 = vector.load %arg6[%c0_18, %c0_19] : memref<1x64xf32, #tpu.memory_space<vmem>>, vector<1x64xf32>
      %21 = vector.broadcast %20 : vector<1x64xf32> to vector<2x64xf32>
      %22 = arith.addf %19, %21 : vector<2x64xf32>
      %cst_20 = arith.constant 0.000000e+00 : f32
      %23 = vector.broadcast %cst_20 : f32 to vector<2x64xf32>
      %24 = arith.maximumf %22, %23 : vector<2x64xf32>
      %c0_21 = arith.constant 0 : index
      %c0_22 = arith.constant 0 : index
      %25 = vector.load %arg7[%c0_21, %c0_22] : memref<64x4xf32, #tpu.memory_space<vmem>>, vector<64x4xf32>
      %cst_23 = arith.constant dense<0.000000e+00> : vector<2x4xf32>
      %26 = tpu.matmul %24, %25, %cst_23 {dimension_numbers = #tpu.dot_dimension_numbers<[1], [0], [0], [1], [0, 0, 1, 1], [], []>} : vector<2x64xf32>, vector<64x4xf32>, vector<2x4xf32> -> vector<2x4xf32>
      %c0_24 = arith.constant 0 : index
      %c0_25 = arith.constant 0 : index
      %27 = vector.load %arg8[%c0_24, %c0_25] : memref<1x4xf32, #tpu.memory_space<vmem>>, vector<1x4xf32>
      %28 = vector.broadcast %27 : vector<1x4xf32> to vector<2x4xf32>
      %29 = arith.addf %26, %28 : vector<2x4xf32>
      %c0_26 = arith.constant 0 : index
      %c0_27 = arith.constant 0 : index
      %30 = vector.load %arg9[%c0_26, %c0_27] : memref<2x4xf32, #tpu.memory_space<vmem>>, vector<2x4xf32>
      tpu.vector_store %arg9[%c0_26, %c0_27], %29 {strides = array<i32>} : memref<2x4xf32, #tpu.memory_space<vmem>>, vector<2x4xf32>,
    } else {
    }
    return
  }
  func.func @transform_0(%arg0: i32, %arg1: i32) -> (i32, i32) {
    %c0_i32 = arith.constant 0 : i32
    return %arg0, %arg1 : i32, i32
  }
  func.func @transform_1(%arg0: i32, %arg1: i32) -> (i32, i32) {
    %c0_i32 = arith.constant 0 : i32
    %c0_i32_0 = arith.constant 0 : i32
    return %arg1, %c0_i32 : i32, i32
  }
  func.func @transform_2(%arg0: i32, %arg1: i32) -> (i32, i32) {
    %c0_i32 = arith.constant 0 : i32
    %c0_i32_0 = arith.constant 0 : i32
    %c0_i32_1 = arith.constant 0 : i32
    return %c0_i32, %c0_i32_0 : i32, i32
  }
  func.func @transform_3(%arg0: i32, %arg1: i32) -> (i32, i32) {
    %c0_i32 = arith.constant 0 : i32
    %c0_i32_0 = arith.constant 0 : i32
    %c0_i32_1 = arith.constant 0 : i32
    return %c0_i32, %c0_i32_0 : i32, i32
  }
  func.func @transform_4(%arg0: i32, %arg1: i32) -> (i32, i32) {
    %c0_i32 = arith.constant 0 : i32
    %c0_i32_0 = arith.constant 0 : i32
    %c0_i32_1 = arith.constant 0 : i32
    return %c0_i32, %c0_i32_0 : i32, i32
  }
  func.func @transform_5(%arg0: i32, %arg1: i32) -> (i32, i32) {
    %c0_i32 = arith.constant 0 : i32
    %c0_i32_0 = arith.constant 0 : i32
    %c0_i32_1 = arith.constant 0 : i32
    return %c0_i32, %c0_i32_0 : i32, i32
  }
  func.func @transform_6(%arg0: i32, %arg1: i32) -> (i32, i32) {
    %c0_i32 = arith.constant 0 : i32
    %c0_i32_0 = arith.constant 0 : i32
    %c0_i32_1 = arith.constant 0 : i32
    return %c0_i32, %c0_i32_0 : i32, i32
  }
  func.func @transform_7(%arg0: i32, %arg1: i32) -> (i32, i32) {
    %c0_i32 = arith.constant 0 : i32
    %c0_i32_0 = arith.constant 0 : i32
    return %arg0, %c0_i32 : i32, i32
  }
}

</mosaic_0001>

<bundles_post_ra>
// kernel: tpu_custom_call.1
= control target key start
LH: loop header
LB: loop body
LE: loop exit
PB: predicated region body
PF: predicated region fallthrough
CT: control target
= control target key end

     0   :  { %s1424_s0 = inlined_call_operand.vmem [shape: bf16[2,1024], index: 0, kind: input, shape index: {}]   ;;  %s1425_s1 = inlined_call_operand.vmem [shape: bf16[1024,64], index: 1, kind: input, shape index: {}]   ;;  %s1426_s2 = inlined_call_operand.vmem [shape: f32[1,64], index: 2, kind: input, shape index: {}]   ;;  %s1427_s3 = inlined_call_operand.vmem [shape: f32[64,64], index: 3, kind: input, shape index: {}]   ;;  %s1428_s4 = inlined_call_operand.vmem [shape: f32[1,64], index: 4, kind: input, shape index: {}]   ;;  %s1429_s5 = inlined_call_operand.vmem [shape: f32[64,4], index: 5, kind: input, shape index: {}]   ;;  %s1430_s6 = inlined_call_operand.vmem [shape: f32[1,4], index: 6, kind: input, shape index: {}]   ;;  %s1431_s7 = inlined_call_operand.hbm [shape: f32[2,4], index: 7, kind: output, shape index: {}]  }
   0x1   :  { %v1037_v0 = vld [vmem:[%s1425_s1 + $0x38] sm:$0xff]  ;;  %v1036_v4 = vld [vmem:[%s1425_s1 + $0x30] sm:$0xff]  ;;  %v1035_v8 = vld [vmem:[%s1425_s1 + $0x28] sm:$0xff] }
   0x2   :  { %v1045_v1 = vld [vmem:[%s1425_s1 + $0x78] sm:$0xff]  ;;  %565 = vmatpush.bf16.msra.mxu0 %v1037_v0  ;;  %v1044_v5 = vld [vmem:[%s1425_s1 + $0x70] sm:$0xff]  ;;  %v1043_v9 = vld [vmem:[%s1425_s1 + $0x68] sm:$0xff] }
   0x3   :  { %v1053_v2 = vld [vmem:[%s1425_s1 + $0xb8] sm:$0xff]  ;;  %578 = vmatpush.bf16.msra.mxu1 %v1045_v1  ;;  %v1052_v6 = vld [vmem:[%s1425_s1 + $0xb0] sm:$0xff]  ;;  %v1051_v10 = vld [vmem:[%s1425_s1 + $0xa8] sm:$0xff] }
   0x4   :  { %v1061_v3 = vld [vmem:[%s1425_s1 + $0xf8] sm:$0xff]  ;;  %591 = vmatpush.bf16.msra.mxu2 %v1053_v2  ;;  %v1060_v7 = vld [vmem:[%s1425_s1 + $0xf0] sm:$0xff]  ;;  %v1059_v11 = vld [vmem:[%s1425_s1 + $0xe8] sm:$0xff] }
   0x5   :  { %604 = vmatpush.bf16.msra.mxu3 %v1061_v3  ;;  %v1034_v12 = vld [vmem:[%s1425_s1 + $0x20] sm:$0xff]  ;;  %v1033_v17 = vld [vmem:[%s1425_s1 + $0x18] sm:$0xff]  ;;  %v1032_v21 = vld [vmem:[%s1425_s1 + $0x10] sm:$0xff] }
   0x6   :  { %566 = vmatpush.bf16.msra.mxu0 %v1036_v4  ;;  %v1042_v13 = vld [vmem:[%s1425_s1 + $0x60] sm:$0xff]  ;;  %v1041_v18 = vld [vmem:[%s1425_s1 + $0x58] sm:$0xff]  ;;  %v1040_v22 = vld [vmem:[%s1425_s1 + $0x50] sm:$0xff] }
   0x7   :  { %579 = vmatpush.bf16.msra.mxu1 %v1044_v5  ;;  %v1050_v14 = vld [vmem:[%s1425_s1 + $0xa0] sm:$0xff]  ;;  %v1049_v19 = vld [vmem:[%s1425_s1 + $0x98] sm:$0xff]  ;;  %v1048_v23 = vld [vmem:[%s1425_s1 + $0x90] sm:$0xff] }
   0x8   :  { %592 = vmatpush.bf16.msra.mxu2 %v1052_v6  ;;  %v1058_v15 = vld [vmem:[%s1425_s1 + $0xe0] sm:$0xff]  ;;  %v1057_v20 = vld [vmem:[%s1425_s1 + $0xd8] sm:$0xff]  ;;  %v1056_v24 = vld [vmem:[%s1425_s1 + $0xd0] sm:$0xff] }
   0x9   :  { %605 = vmatpush.bf16.msra.mxu3 %v1060_v7  ;;  %v34_v16 = vld [vmem:[%s1424_s0] sm:$0xff] }
   0xa   :  { %567 = vmatpush.bf16.msra.mxu0 %v1035_v8  ;;  %164 = vst [vmem:[#allocation1] ss:$9 sm:$0xff] %v34_v16 }
   0xb   :  { %580 = vmatpush.bf16.msra.mxu1 %v1043_v9 }
   0xc   :  { %593 = vmatpush.bf16.msra.mxu2 %v1051_v10 }
   0xd   :  { %606 = vmatpush.bf16.msra.mxu3 %v1059_v11 }
   0xe   :  { %568 = vmatpush.bf16.msra.mxu0 %v1034_v12 }
   0xf   :  { %581 = vmatpush.bf16.msra.mxu1 %v1042_v13 }
  0x10   :  { %594 = vmatpush.bf16.msra.mxu2 %v1050_v14 }
  0x11   :  { %607 = vmatpush.bf16.msra.mxu3 %v1058_v15 }
  0x12   :  { %569 = vmatpush.bf16.msra.mxu0 %v1033_v17 }
  0x13   :  { %582 = vmatpush.bf16.msra.mxu1 %v1041_v18 }
  0x14   :  { %595 = vmatpush.bf16.msra.mxu2 %v1049_v19 }
  0x15   :  { %608 = vmatpush.bf16.msra.mxu3 %v1057_v20 }
  0x16   :  { %12 = vsyncpa [#allocation4], 0  ;;  %570 = vmatpush.bf16.msra.mxu0 %v1032_v21  ;;  %v1031_v25 = vld [vmem:[%s1425_s1 + $0x8] sm:$0xff]  ;;  %v1030_v29 = vld [vmem:[%s1425_s1] sm:$0xff]  ;;  %vm31_vm0 = vcmask 517120   ;;  %v1125_v11 = vmov 0.0  }
  0x17   :  { %583 = vmatpush.bf16.msra.mxu1 %v1040_v22  ;;  %v1039_v26 = vld [vmem:[%s1425_s1 + $0x48] sm:$0xff]  ;;  %v1038_v30 = vld [vmem:[%s1425_s1 + $0x40] sm:$0xff]  ;;  %v1069_v33 = vld [vmem:[%s1425_s1 + $0x138] sm:$0xff]  ;;  %32 = vst.msk [vmem:[#allocation2] sm:$0x3] %vm31_vm0, %v1125_v11  ;;  %vm694_vm1 = vcmask 523264  }
  0x18   :  { %596 = vmatpush.bf16.msra.mxu2 %v1048_v23  ;;  %v1047_v27 = vld [vmem:[%s1425_s1 + $0x88] sm:$0xff]  ;;  %v1046_v31 = vld [vmem:[%s1425_s1 + $0x80] sm:$0xff]  ;;  %v1077_v34 = vld [vmem:[%s1425_s1 + $0x178] sm:$0xff]  ;;  %s1126_s21 = smov [#allocation3]   ;;  %s763_s25 = sshll.u32 %s1431_s7, 4  ;;  %vm754_vm2 = vcmask 25600   ;;  %s764_s25 = int_to_ptr.hbm [resolvable:$true] %s763_s25 }
  0x19   :  { %609 = vmatpush.bf16.msra.mxu3 %v1056_v24  ;;  %v1055_v28 = vld [vmem:[%s1425_s1 + $0xc8] sm:$0xff]  ;;  %v1054_v32 = vld [vmem:[%s1425_s1 + $0xc0] sm:$0xff]  ;;  %v1085_v35 = vld [vmem:[%s1425_s1 + $0x1b8] sm:$0xff]  ;;  %s761_s22 = sshll.u32 %s1126_s21, 4  ;;  %s762_s22 = int_to_ptr.vmem [resolvable:$true] %s761_s22 }
  0x1a   :  { %571 = vmatpush.bf16.msra.mxu0 %v1031_v25  ;;  %v1093_v36 = vld [vmem:[%s1425_s1 + $0x1f8] sm:$0xff]  ;;  %v1068_v37 = vld [vmem:[%s1425_s1 + $0x130] sm:$0xff]  ;;  %v165_v39 = vld [vmem:[#allocation1] sm:$0xff] }
  0x1b   :  { %584 = vmatpush.bf16.msra.mxu1 %v1039_v26  ;;  %v167_v38 = vld [vmem:[#allocation1 + $0x12] sm:$0xff]  ;;  %v168_v41 = vld [vmem:[#allocation1 + $0x1b] sm:$0xff]  ;;  %v166_v42 = vld [vmem:[#allocation1 + $0x9] sm:$0xff] }
  0x1c   :  { %597 = vmatpush.bf16.msra.mxu2 %v1047_v27  ;;  %v1076_v40 = vld [vmem:[%s1425_s1 + $0x170] sm:$0xff]  ;;  %v1067_v45 = vld [vmem:[%s1425_s1 + $0x128] sm:$0xff]  ;;  %v1066_v49 = vld [vmem:[%s1425_s1 + $0x120] sm:$0xff] }
  0x1d   :  { %610 = vmatpush.bf16.msra.mxu3 %v1055_v28  ;;  %v1084_v43 = vld [vmem:[%s1425_s1 + $0x1b0] sm:$0xff]  ;;  %v1075_v46 = vld [vmem:[%s1425_s1 + $0x168] sm:$0xff]  ;;  %v1074_v50 = vld [vmem:[%s1425_s1 + $0x160] sm:$0xff] }
  0x1e   :  { %572 = vmatpush.bf16.msra.mxu0 %v1030_v29  ;;  %v1092_v44 = vld [vmem:[%s1425_s1 + $0x1f0] sm:$0xff]  ;;  %v1083_v47 = vld [vmem:[%s1425_s1 + $0x1a8] sm:$0xff]  ;;  %v1082_v51 = vld [vmem:[%s1425_s1 + $0x1a0] sm:$0xff] }
  0x1f   :  { %585 = vmatpush.bf16.msra.mxu1 %v1038_v30  ;;  %v1091_v48 = vld [vmem:[%s1425_s1 + $0x1e8] sm:$0xff]  ;;  %v1090_v52 = vld [vmem:[%s1425_s1 + $0x1e0] sm:$0xff]  ;;  %v1065_v53 = vld [vmem:[%s1425_s1 + $0x118] sm:$0xff] }
  0x20   :  { %598 = vmatpush.bf16.msra.mxu2 %v1046_v31  ;;  %v1073_v54 = vld [vmem:[%s1425_s1 + $0x158] sm:$0xff]  ;;  %v1064_v57 = vld [vmem:[%s1425_s1 + $0x110] sm:$0xff]  ;;  %v1063_v61 = vld [vmem:[%s1425_s1 + $0x108] sm:$0xff] }
  0x21   :  { %611 = vmatpush.bf16.msra.mxu3 %v1054_v32  ;;  %573 = vmatmul.bf16.vlgmr.msra.gmra.mxu0 %v165_v39  ;;  %v1081_v55 = vld [vmem:[%s1425_s1 + $0x198] sm:$0xff]  ;;  %v1072_v58 = vld [vmem:[%s1425_s1 + $0x150] sm:$0xff]  ;;  %v1071_v62 = vld [vmem:[%s1425_s1 + $0x148] sm:$0xff] }
  0x22   :  { %617 = vmatpush.bf16.msrb.mxu0 %v1069_v33  ;;  %586 = vmatmul.bf16.vlgmr.msra.gmra.mxu1 %v166_v42  ;;  %v1089_v56 = vld [vmem:[%s1425_s1 + $0x1d8] sm:$0xff]  ;;  %v1080_v59 = vld [vmem:[%s1425_s1 + $0x190] sm:$0xff]  ;;  %v1079_v63 = vld [vmem:[%s1425_s1 + $0x188] sm:$0xff] }
  0x23   :  { %630 = vmatpush.bf16.msrb.mxu1 %v1077_v34  ;;  %599 = vmatmul.bf16.vlgmr.msra.gmra.mxu2 %v167_v38  ;;  %v1088_v60 = vld [vmem:[%s1425_s1 + $0x1d0] sm:$0xff]  ;;  %v1087_v0 = vld [vmem:[%s1425_s1 + $0x1c8] sm:$0xff]  ;;  %v1062_v1 = vld [vmem:[%s1425_s1 + $0x100] sm:$0xff] }
  0x24   :  { %643 = vmatpush.bf16.msrb.mxu2 %v1085_v35  ;;  %612 = vmatmul.bf16.vlgmr.msra.gmra.mxu3 %v168_v41  ;;  %v1070_v2 = vld [vmem:[%s1425_s1 + $0x140] sm:$0xff]  ;;  %v170_v6 = vld [vmem:[#allocation1 + $0x2d] sm:$0xff]  ;;  %v171_v7 = vld [vmem:[#allocation1 + $0x36] sm:$0xff] }
  0x25   :  { %656 = vmatpush.bf16.msrb.mxu3 %v1093_v36  ;;  %v1078_v3 = vld [vmem:[%s1425_s1 + $0x180] sm:$0xff]  ;;  %v689_v14 = vld [vmem:[%s1427_s3 + $0x38] sm:$0xff]  ;;  %v688_v17 = vld [vmem:[%s1427_s3 + $0x30] sm:$0xff] }
  0x26   :  { %618 = vmatpush.bf16.msrb.mxu0 %v1068_v37  ;;  %v1086_v4 = vld [vmem:[%s1425_s1 + $0x1c0] sm:$0xff]  ;;  %v687_v18 = vld [vmem:[%s1427_s3 + $0x28] sm:$0xff]  ;;  %v685_v20 = vld [vmem:[%s1427_s3 + $0x18] sm:$0xff] }
  0x27   :  { %631 = vmatpush.bf16.msrb.mxu1 %v1076_v40  ;;  %v169_v5 = vld [vmem:[#allocation1 + $0x24] sm:$0xff]  ;;  %v684_v23 = vld [vmem:[%s1427_s3 + $0x10] sm:$0xff]  ;;  %v726_v27 = vld [vmem:[%s1429_s5 + $0x38] sm:$0xff] }
  0x28   :  { %644 = vmatpush.bf16.msrb.mxu2 %v1084_v43  ;;  %v172_v8 = vld [vmem:[#allocation1 + $0x3f] sm:$0xff]  ;;  %v683_v24 = vld [vmem:[%s1427_s3 + $0x8] sm:$0xff]  ;;  %v725_v28 = vld [vmem:[%s1429_s5 + $0x30] sm:$0xff] }
  0x29   :  { %657 = vmatpush.bf16.msrb.mxu3 %v1092_v44  ;;  %v686_v19 = vld [vmem:[%s1427_s3 + $0x20] sm:$0xff]  ;;  %v724_v30 = vld [vmem:[%s1429_s5 + $0x28] sm:$0xff]  ;;  %v722_v35 = vld [vmem:[%s1429_s5 + $0x18] sm:$0xff] }
  0x2a   :  { %619 = vmatpush.bf16.msrb.mxu0 %v1067_v45  ;;  %v682_v25 = vld [vmem:[%s1427_s3] sm:$0xff]  ;;  %v721_v37 = vld [vmem:[%s1429_s5 + $0x10] sm:$0xff]  ;;  %v33_v44 = vld [vmem:[#allocation2] sm:$0x3] }
  0x2b   :  { %632 = vmatpush.bf16.msrb.mxu1 %v1075_v46  ;;  %v723_v31 = vld [vmem:[%s1429_s5 + $0x20] sm:$0xff] }
  0x2c   :  { %645 = vmatpush.bf16.msrb.mxu2 %v1083_v47 }
  0x2d   :  { %658 = vmatpush.bf16.msrb.mxu3 %v1091_v48 }
  0x2e   :  { %620 = vmatpush.bf16.msrb.mxu0 %v1066_v49  ;;  %v1096_v49 = vld [vmem:[%s1426_s2] ss:$0 sm:$0xff] }
  0x2f   :  { %633 = vmatpush.bf16.msrb.mxu1 %v1074_v50 }
  0x30   :  { %646 = vmatpush.bf16.msrb.mxu2 %v1082_v51 }
  0x31   :  { %659 = vmatpush.bf16.msrb.mxu3 %v1090_v52 }
  0x32   :  { %621 = vmatpush.bf16.msrb.mxu0 %v1065_v53  ;;  %v720_v53 = vld [vmem:[%s1429_s5 + $0x8] sm:$0xff] }
  0x33   :  { %634 = vmatpush.bf16.msrb.mxu1 %v1073_v54  ;;  %v719_v54 = vld [vmem:[%s1429_s5] sm:$0xff] }
  0x34   :  { %647 = vmatpush.bf16.msrb.mxu2 %v1081_v55  ;;  %v1097_v55 = vld [vmem:[%s1428_s4] ss:$0 sm:$0xff] }
  0x35   :  { %660 = vmatpush.bf16.msrb.mxu3 %v1089_v56 }
  0x36   :  { %622 = vmatpush.bf16.msrb.mxu0 %v1064_v57 }
  0x37   :  { %635 = vmatpush.bf16.msrb.mxu1 %v1072_v58 }
  0x38   :  { %648 = vmatpush.bf16.msrb.mxu2 %v1080_v59  ;;  %v1098_v59 = vld [vmem:[%s1430_s6] ss:$0 sm:$0xff] }
  0x39   :  { %661 = vmatpush.bf16.msrb.mxu3 %v1088_v60 }
  0x3a   :  { %623 = vmatpush.bf16.msrb.mxu0 %v1063_v61 }
  0x3b   :  { %636 = vmatpush.bf16.msrb.mxu1 %v1071_v62 }
  0x3c   :  { %649 = vmatpush.bf16.msrb.mxu2 %v1079_v63 }
  0x3d   :  { %662 = vmatpush.bf16.msrb.mxu3 %v1087_v0 }
  0x3e   :  { %624 = vmatpush.bf16.msrb.mxu0 %v1062_v1 }
  0x3f   :  { %637 = vmatpush.bf16.msrb.mxu1 %v1070_v2 }
  0x40   :  { %650 = vmatpush.bf16.msrb.mxu2 %v1078_v3 }
  0x41   :  { %663 = vmatpush.bf16.msrb.mxu3 %v1086_v4  ;;  %625 = vmatmul.bf16.vlgmr.msrb.gmra.mxu0 %v169_v5 }
  0x42   :  { %638 = vmatmul.bf16.vlgmr.msrb.gmra.mxu1 %v170_v6  ;;  %706 = vmatpush.msra.mxu0 %v689_v14 }
  0x43   :  { %651 = vmatmul.bf16.vlgmr.msrb.gmra.mxu2 %v171_v7  ;;  %742 = vmatpush.msra.mxu1 %v726_v27 }
  0x44   :  { %664 = vmatmul.bf16.vlgmr.msrb.gmra.mxu3 %v172_v8  ;;  %707 = vmatpush.msra.mxu0 %v688_v17 }
  0x45   :  { %743 = vmatpush.msra.mxu1 %v725_v28 }
  0x46   :  { %708 = vmatpush.msra.mxu0 %v687_v18 }
  0x47   :  { %744 = vmatpush.msra.mxu1 %v724_v30 }
  0x48   :  { %709 = vmatpush.msra.mxu0 %v686_v19 }
  0x49   :  { %745 = vmatpush.msra.mxu1 %v723_v31 }
  0x4a   :  { %710 = vmatpush.msra.mxu0 %v685_v20 }
  0x4b   :  { %746 = vmatpush.msra.mxu1 %v722_v35 }
  0x4c   :  { %711 = vmatpush.msra.mxu0 %v684_v23 }
  0x4d   :  { %747 = vmatpush.msra.mxu1 %v721_v37 }
  0x4e   :  { %712 = vmatpush.msra.mxu0 %v683_v24 }
  0x4f   :  { %748 = vmatpush.msra.mxu1 %v720_v53 }
  0x50   :  { %713 = vmatpush.msra.mxu0 %v682_v25 }
  0x51   :  { %749 = vmatpush.msra.mxu1 %v719_v54 }
  0x9e   :  { %v574_v9 = vpop.f32.mrf.mxu0 }
  0x9f   :  { %v587_v10 = vpop.f32.mrf.mxu1 }
  0xa0   :  { %v588_v26 = vadd.f32 %v587_v10, %v574_v9 }
  0xa6   :  { %v600_v12 = vpop.f32.mrf.mxu2  ;;  %v576_v15 = vpop.f32.mrf.mxu0 }
  0xa7   :  { %v613_v13 = vpop.f32.mrf.mxu3  ;;  %v589_v16 = vpop.f32.mrf.mxu1  ;;  %v601_v29 = vadd.f32 %v600_v12, %v588_v26 }
  0xa9   :  { %v614_v32 = vadd.f32 %v613_v13, %v601_v29 }
  0xae   :  { %v602_v21 = vpop.f32.mrf.mxu2 }
  0xaf   :  { %v615_v22 = vpop.f32.mrf.mxu3 }
  0xbe   :  { %v626_v33 = vpop.f32.mrf.mxu0 }
  0xbf   :  { %v639_v34 = vpop.f32.mrf.mxu1  ;;  %v627_v36 = vadd.f32 %v626_v33, %v614_v32 }
  0xc1   :  { %v640_v38 = vadd.f32 %v639_v34, %v627_v36 }
  0xc6   :  { %v652_v39 = vpop.f32.mrf.mxu2  ;;  %v628_v42 = vpop.f32.mrf.mxu0 }
  0xc7   :  { %v665_v40 = vpop.f32.mrf.mxu3  ;;  %v653_v41 = vadd.f32 %v652_v39, %v640_v38  ;;  %v641_v43 = vpop.f32.mrf.mxu1 }
  0xc9   :  { %v666_v45 = vadd.f32 %v665_v40, %v653_v41 }
  0xcb   :  { %v669_v46 = vadd.f32 %v666_v45, %v33_v44 }
  0xcd   :  { %671 = vst.msk [vmem:[#allocation2] sm:$0x3] %vm31_vm0, %v669_v46 }
  0xce   :  { %v654_v47 = vpop.f32.mrf.mxu2 }
  0xcf   :  { %v667_v48 = vpop.f32.mrf.mxu3 }
  0xd4   :  { %v675_v50 = vld [vmem:[#allocation2] sm:$0x3] }
  0xd5   :  { %v680_v51 = vadd.f32 %v1096_v49, %v675_v50 }
  0xd7   :  { %v681_v52 = vmax.f32 %v680_v51, 0.0 }
  0xd9   :  { %1028 = vmatmul.msk.f32.vlgmr.msra.gmra.mxu0 %vm694_vm1, %v681_v52 }
 0x156   :  { %v715_v56 = vpop.f32.mrf.mxu0 }
 0x157   :  { %v716_v57 = vadd.f32 %v1097_v55, %v715_v56 }
 0x159   :  { %v718_v58 = vmax.f32 %v716_v57, 0.0 }
 0x15b   :  { %1029 = vmatmul.msk.f32.vlgmr.msra.gmra.mxu1 %vm694_vm1, %v718_v58 }
 0x1d8   :  { %v751_v60 = vpop.f32.mrf.mxu1 }
 0x1d9   :  { %v752_v61 = vadd.f32 %v1098_v59, %v751_v60 }
 0x1db   :  { %755 = vst.msk [vmem:[#allocation3] sm:$0x3] %vm754_vm2, %v752_v61 }
 0x1dc   :  { %766 = dma.vmem_to_hbm [thread:$0]  %s762_s22, 32, %s764_s25, [#allocation4]  }
 0x1dd   :  { %1123 = dma.done.wait [#allocation4], 32  }
 0x1de   :  { %1124 = vsyncadd [#allocation4], 4294967264 }
 0x1df   :  { %771 = vsyncpa [#allocation4], 1 }

</bundles_post_ra>
